<compile_context>
chip_gen: v6e
topology: v6e:2x2x1
jax: 0.10.0
libtpu: 0.0.40
codegen_flags: <defaults>
</compile_context>

<pallas_src>
import jax
import jax.numpy as jnp
from jax.experimental import pallas as pl
from jax.experimental.pallas import tpu as pltpu


def _round_up(x: int, m: int) -> int:
    return ((x + m - 1) // m) * m


def _unpatch_matmul_kernel(x_ref, w_ref, o_ref):
    # x_ref: (tm, K) in x's native dtype; w_ref: (K, Np) in compute dtype;
    # o_ref: (tm, Np) in x's dtype. MXU accumulates in f32 regardless.
    x = x_ref[...].astype(w_ref.dtype)           # no-op when compute dtype == x dtype
    o_ref[...] = jnp.dot(
        x, w_ref[...], preferred_element_type=jnp.float32
    ).astype(o_ref.dtype)


def unpatchify_matmul(
    x2d: jax.Array,
    w2d: jax.Array,
    *,
    tm: int = 2048,
    vmem_budget_bytes: int = 8 << 20,
) -> jax.Array:
    """x2d: (M, K) flattened tokens (native dtype); w2d: (K, Np), Np % 128 == 0. Returns (M, Np)."""
    M, K = x2d.shape
    K2, Np = w2d.shape
    assert K == K2
    assert Np % 128 == 0

    itemsize = jnp.dtype(x2d.dtype).itemsize
    # (a) VMEM cap: double-buffered (tm,K) input + (tm,Np) output tiles must fit the budget
    #     (weight tile is ~64 KiB and ignored). Keeps the tm sweep safe on v5e's ~16 MiB
    #     default scoped VMEM and v7x's 64 MiB physical VMEM without touching vmem_limit_bytes.
    tm_vmem = max(8, vmem_budget_bytes // (2 * (K + Np) * itemsize))
    # (b) Megacore cap: keep >= ~4 grid steps so the "parallel" axis can be split across
    #     v7x's two TensorCores even for mid-sized M.
    tm_mega = max(8, _round_up(pl.cdiv(M, 4), 8))
    tm_eff = _round_up(max(8, min(tm, tm_vmem, tm_mega)), 8)   # f32 sublane multiple

    grid = pl.cdiv(M, tm_eff)   # ragged last block handled by Pallas (OOB writes masked)

    return pl.pallas_call(
        _unpatch_matmul_kernel,
        out_shape=jax.ShapeDtypeStruct((M, Np), x2d.dtype),
        grid_spec=pltpu.PrefetchScalarGridSpec(
            num_scalar_prefetch=0,
            grid=(grid,),
            in_specs=[
                pl.BlockSpec((tm_eff, K), lambda i: (i, 0)),
                pl.BlockSpec((K, Np), lambda i: (0, 0)),   # invariant weight tile
            ],
            out_specs=pl.BlockSpec((tm_eff, Np), lambda i: (i, 0)),
        ),
        compiler_params=pltpu.CompilerParams(dimension_semantics=("parallel",)),
    )(x2d, w2d)


def unpatchify_linear(
    x: jax.Array,
    weight: jax.Array,
    patch_size: int,
    *,
    compute_dtype=None,   # None -> use x.dtype (matches PyTorch f32 semantics); jnp.bfloat16 is a bandwidth knob
    tm: int = 2048,
) -> jax.Array:
    """
    x:      (B, H, W, latent_dim)            [HWC layout]
    weight: (latent_dim, 3, p, p)            [same layout as PyTorch ConvTranspose2d.weight]
    returns (B, H*p, W*p, 3)                 [HWC layout, same dtype as x]
    """
    B, H, W, C = x.shape
    p = patch_size
    c_out = weight.shape[1]
    N = p * p * c_out
    Np = _round_up(N, 128)
    compute_dtype = x.dtype if compute_dtype is None else compute_dtype

    # Weight prep (tiny: C x Np elements). Reorder columns to (i, j, c_out) so the matmul
    # output is already HWC per patch, then zero-pad the lane dim to a multiple of 128 for
    # unmasked lane-dense stores. Constant-folds under jit; precompute once per model if
    # calling eagerly in a loop.
    w2d = jnp.transpose(weight, (0, 2, 3, 1)).reshape(C, N)
    if Np != N:
        w2d = jnp.pad(w2d, ((0, 0), (0, Np - N)))
    w2d = w2d.astype(compute_dtype)

    # No wrapper-side cast / pad of x: the kernel reads x at its native dtype and handles the
    # ragged last row block itself.
    x2d = x.reshape(B * H * W, C)
    y2d = unpatchify_matmul(x2d, w2d, tm=tm)                  # (B*H*W, Np), dtype = x.dtype

    # TODO(synk): fuse this pixel-shuffle into the kernel's output writeback via a 2-D grid over
    # (B*H, W-tiles) writing (p, tw*p*c_out) blocks into a (B*H, p, W*p*c_out) output view; that
    # is only lane-clean when tw*p*c_out is a multiple of 128 (p=5, c_out=3 -> tw % 128 == 0),
    # so for small W (including the shapes in __main__) it stays in plain JAX.
    y = y2d[:, :N].reshape(B, H, W, p, p, c_out)
    y = jnp.transpose(y, (0, 1, 3, 2, 4, 5))                  # (B, H, p, W, p, c_out)
    return y.reshape(B, H * p, W * p, c_out)                  # dtype already == x.dtype


if __name__ == "__main__":
    patch_size = 5
    latent_dim = 128
    B, H, W = 2, 4, 4

    key = jax.random.PRNGKey(0)
    kx, kw = jax.random.split(key)
    x = jax.random.normal(kx, (B, H, W, latent_dim), dtype=jnp.float32)
    # ConvTranspose2d(latent_dim, 3, p, p, bias=False).weight has shape (latent_dim, 3, p, p)
    weight = jax.random.normal(kw, (latent_dim, 3, patch_size, patch_size),
                               dtype=jnp.float32) * 0.02

    out = unpatchify_linear(x, weight, patch_size)
    out = jax.block_until_ready(out)

    # Pure-JAX f32 reference (same math, no Pallas) to sanity check the kernel.
    w2d_ref = jnp.transpose(weight, (0, 2, 3, 1)).reshape(latent_dim, -1)
    ref = (x.reshape(-1, latent_dim) @ w2d_ref).reshape(B, H, W, patch_size, patch_size, 3)
    ref = jnp.transpose(ref, (0, 1, 3, 2, 4, 5)).reshape(B, H * patch_size, W * patch_size, 3)

    assert out.shape == (B, H * patch_size, W * patch_size, 3), out.shape
    assert out.dtype == x.dtype
    # Full f32 path (f32 inputs, f32 MXU accumulation, f32 stores) -> tight tolerance.
    assert jnp.allclose(out, ref, atol=1e-3, rtol=1e-3)
    print("KERNEL_OK")
</pallas_src>

<mosaic_0001>
module attributes {stable_mosaic.version = 11 : i64} {
  func.func @_unpatch_matmul_kernel(%arg0: i32, %arg1: memref<8x128xf32, #tpu.memory_space<vmem>>, %arg2: memref<128x128xf32, #tpu.memory_space<vmem>>, %arg3: memref<8x128xf32, #tpu.memory_space<vmem>>) attributes {dimension_semantics = [#tpu.dimension_semantics<parallel>], iteration_bounds = array<i64: 4>, scalar_prefetch = 0 : i64, scratch_operands = 0 : i64, tpu.core_type = #tpu.core_type<tc>, window_params = [{transform_indices = @transform_0, window_bounds = array<i64: 8, 128>}, {pipeline_mode = #tpu.pipeline_mode<synchronous>, transform_indices = @transform_1, window_bounds = array<i64: 128, 128>}, {transform_indices = @transform_2, window_bounds = array<i64: 8, 128>}]} {
    %c0 = arith.constant 0 : index
    %c0_0 = arith.constant 0 : index
    %0 = vector.load %arg1[%c0, %c0_0] : memref<8x128xf32, #tpu.memory_space<vmem>>, vector<8x128xf32>
    %c0_1 = arith.constant 0 : index
    %c0_2 = arith.constant 0 : index
    %1 = vector.load %arg2[%c0_1, %c0_2] : memref<128x128xf32, #tpu.memory_space<vmem>>, vector<128x128xf32>
    %cst = arith.constant dense<0.000000e+00> : vector<8x128xf32>
    %2 = tpu.matmul %0, %1, %cst {dimension_numbers = #tpu.dot_dimension_numbers<[1], [0], [0], [1], [0, 0, 1, 1], [], []>} : vector<8x128xf32>, vector<128x128xf32>, vector<8x128xf32> -> vector<8x128xf32>
    %c0_3 = arith.constant 0 : index
    %c0_4 = arith.constant 0 : index
    %3 = vector.load %arg3[%c0_3, %c0_4] : memref<8x128xf32, #tpu.memory_space<vmem>>, vector<8x128xf32>
    tpu.vector_store %arg3[%c0_3, %c0_4], %2 {strides = array<i32>} : memref<8x128xf32, #tpu.memory_space<vmem>>, vector<8x128xf32>,
    return
  }
  func.func @transform_0(%arg0: i32) -> (i32, i32) {
    %c0_i32 = arith.constant 0 : i32
    %c0_i32_0 = arith.constant 0 : i32
    return %arg0, %c0_i32 : i32, i32
  }
  func.func @transform_1(%arg0: i32) -> (i32, i32) {
    %c0_i32 = arith.constant 0 : i32
    %c0_i32_0 = arith.constant 0 : i32
    %c0_i32_1 = arith.constant 0 : i32
    return %c0_i32, %c0_i32_0 : i32, i32
  }
  func.func @transform_2(%arg0: i32) -> (i32, i32) {
    %c0_i32 = arith.constant 0 : i32
    %c0_i32_0 = arith.constant 0 : i32
    return %arg0, %c0_i32 : i32, i32
  }
}

</mosaic_0001>

<bundles_post_ra>
// kernel: tpu_custom_call.1
= control target key start
LH: loop header
LB: loop body
LE: loop exit
PB: predicated region body
PF: predicated region fallthrough
CT: control target
= control target key end

     0   :  { %7 = vsyncpa [#allocation3], 0  ;;  %s800_s0 = inlined_call_operand.hbm [shape: f32[32,128], index: 0, kind: input, shape index: {}]   ;;  %s801_s1 = inlined_call_operand.hbm [shape: f32[128,128], index: 1, kind: input, shape index: {}]   ;;  %s802_s2 = inlined_call_operand.hbm [shape: f32[32,128], index: 2, kind: output, shape index: {}]  }
   0x1   :  { %9 = vsyncpa [#allocation3 + $0x1], 0 }
   0x2   :  { %10 = vsyncpa [#allocation6], 0 }
   0x3   :  { %11 = vsyncpa [#allocation4], 0 }
   0x4   :  { %13 = vsyncpa [#allocation4 + $0x1], 0  ;;  %s629_s9 = smov 0   ;;  %s631_s10 = smov 0  }
   0x5   :  { %s633_s11 = smov 0   ;;  %s635_s12 = smov 0  }
   0x6 LB: > { %s650_s13 = sadd.s32 4294967295, %s605_s12   ;;  %s356_s14 = sadd.s32 4294967294, %s605_s12   ;;  %s605_s12 = sphi %s635_s12, %s823_s12   ;;  %s601_s11 = sphi %s633_s11, %s822_s11   ;;  %s597_s10 = sphi %s631_s10, %s821_s10   ;;  %s593_s9 = sphi %s629_s9, %s820_s9  }
   0x7   : > { %p39_p0 = scmp.ne.s32.totalorder %s597_s10, %s593_s9  ;;  %p803_p1 = scmp.eq.s32.totalorder %s650_s13, 0 }
   0x8   : > { %p90_p3 = scmp.eq.s32.totalorder %s356_s14, 3  ;;  %p357_p5 = scmp.ge.s32.totalorder %s605_s12, 1 }
   0x9   : > { %p659_p4 = por %p803_p1, %p39_p0  ;;  %p97_p7 = scmp.lt.s32.totalorder %s605_s12, 5 }
   0xa   : > { %p664_p6 = por %p90_p3, %p39_p0  ;;  %s607_s18 = smov [#allocation5]  }
   0xb   : > { %s807_s15 = scalar_select %p659_p4, 1, 0 }
   0xc   : > { %s808_s16 = scalar_select %p664_p6, 1, 0 }
   0xd   : > { %p669_p8 = pnand %p357_p5, %p97_p7  ;;  %s109_s19 = sshll.u32 %s607_s18, 4  ;;  %s110_s19 = int_to_ptr.vmem [resolvable:$true] %s109_s19 }
   0xe   : > { %s682_s21 = sadd.s32 1, %s605_s12   ;;  %s26_s22 = sadd.s32 1, %s601_s11 }
   0xf   : > { %s809_s17 = scalar_select %p669_p8, 1, 0 }
  0x10   : > { %p430_p9 = pneg %p669_p8  ;;  %s23_s23 = ssub.s32 %s605_s12, %s682_s21 }
  0x11   : > { %s494_s24 = scalar_lea.vmem %s110_s19, 2048  ;;  %p502_p3 = scmp.lt.s32.totalorder %s110_s19, %s110_s19 }
  0x12   : > { %p677_p10 = pnand %p430_p9, %p803_p1  ;;  %p495_p12 = scmp.ne.s32.totalorder %s110_s19, %s494_s24 }
  0x13   : > { %p503_p5 = scmp.lt.s32.totalorder %s494_s24, %s494_s24 }
  0x14   : > { %p485_p11 = pneg %p677_p10 }
  0x15   : > { %p504_p7 = por %p503_p5, %p502_p3 }
  0x16   : > { %p497_p13 = pnand %p495_p12, %p485_p11 }
  0x18   : > { %p498_p0 = pneg %p497_p13 }
  0x1a   : > { %p505_p2 = pnand %p504_p7, %p498_p0 }
  0x1c   : > { %508 = shalt.err (!%p505_p2)
}
  0x1d   : > { %s608_s25 = smov 128   ;;  %s609_s26 = smov 8  }
  0x1e   : > { %433 = dma.hbm_to_vmem [thread:$0]  (!%p677_p10), %s801_s1, 2048, %s110_s19, [#allocation6], %s608_s25, %s608_s25, %s609_s26  }
  0x1f   : > { %p24_p9 = scmp.eq.s32.totalorder %s23_s23, 0  ;;  %p33_p11 = scmp.ne.s32.totalorder %s601_s11, %s597_s10 }
  0x20   : > { %p34_p12 = scmp.eq.s32.totalorder %s605_s12, 0  ;;  %p443_p2 = scmp.lt.s32.totalorder %s605_s12, 4 }
  0x21   : > { %s699_s29 = scalar_select %p24_p9, %s601_s11, %s26_s22  }
  0x22   : > { %p35_p13 = por %p34_p12, %p33_p11  ;;  %p811_p0 = scmp.eq.s32.totalorder %s650_s13, 3 }
  0x23   : > { %s123_s3 = sand.u32 1, %s601_s11   ;;  %s361_s4 = sshll.u32 %s605_s12, 7 }
  0x24   : > { %p703_p3 = por %p811_p0, %p33_p11  ;;  %s360_s5 = sshll.u32 %s123_s3, 3 }
  0x25   : > { %s712_s8 = scalar_lea.hbm %s800_s0, %s361_s4  ;;  %s127_s14 = scalar_lea.vmem [#allocation2], %s360_s5 }
  0x26   : > { %s812_s30 = scalar_select %p703_p3, 1, 0 }
  0x27   : > { %s134_s18 = sshll.u32 %s127_s14, 4  ;;  %p714_p10 = pnand %p443_p2, %p35_p13  ;;  %s135_s18 = int_to_ptr.vmem [resolvable:$true] %s134_s18 }
  0x28   : > { %s124_s20 = scalar_lea.sflag [#allocation3], %s123_s3  ;;  %s509_s22 = scalar_lea.hbm %s712_s8, 128 }
  0x29   : > { %p510_p5 = scmp.ne.s32.totalorder %s712_s8, %s509_s22  ;;  %p511_p7 = pneg %p714_p10 }
  0x2a   : > { %s514_s25 = scalar_lea.hbm %s800_s0, 512  ;;  %p515_p12 = scmp.lt.s32.totalorder %s712_s8, %s800_s0 }
  0x2b   : > { %p512_p9 = pnand %p511_p7, %p510_p5  ;;  %p516_p2 = scmp.lt.s32.totalorder %s514_s25, %s509_s22 }
  0x2d   : > { %p513_p11 = pneg %p512_p9  ;;  %p517_p13 = por %p516_p2, %p515_p12 }
  0x2f   : > { %p518_p0 = pnand %p517_p13, %p513_p11 }
  0x31   : > { %521 = shalt.err (!%p518_p0)
}
  0x32   : > { %s522_s28 = scalar_lea.vmem %s135_s18, 128  ;;  %s610_s3 = smov [#allocation2]  }
  0x33   : > { %p523_p1 = scmp.ne.s32.totalorder %s135_s18, %s522_s28  ;;  %s527_s4 = sshll.u32 %s610_s3, 4  ;;  %s528_s4 = int_to_ptr.vmem [resolvable:$false] %s527_s4 }
  0x34   : > { %s529_s5 = scalar_lea.vmem %s528_s4, 256  ;;  %p530_p5 = scmp.lt.s32.totalorder %s135_s18, %s528_s4 }
  0x35   : > { %p525_p6 = pnand %p523_p1, %p511_p7  ;;  %p531_p9 = scmp.lt.s32.totalorder %s529_s5, %s522_s28 }
  0x37   : > { %p526_p3 = pneg %p525_p6  ;;  %p532_p4 = por %p531_p9, %p530_p5 }
  0x39   : > { %p533_p8 = pnand %p532_p4, %p526_p3 }
  0x3b   : > { %536 = shalt.err (!%p533_p8)
}
  0x3c   : > { %437 = dma.hbm_to_vmem [thread:$0]  (!%p714_p10), %s712_s8, 128, %s135_s18, %s124_s20  }
  0x3d   : > { %p814_p11 = scmp.ne.s32.totalorder %s809_s17, 0 }
  0x3e   : > { %s735_s6 = sand.u32 (!%p814_p11), 1, %s597_s10   ;;  %p815_p1 = scmp.ne.s32.totalorder (!%p814_p11), %s807_s15, 0 }
  0x3f   : > { %143 = sbr.rel (%p814_p11) target bundleno = 312 (0x138), region = 28  ;;  %s363_s7 = sshll.u32 (!%p814_p11), %s735_s6, 3 }
  0x40   : > { %s146_s14 = scalar_lea.sflag (!%p814_p11), [#allocation3], %s735_s6  ;;  %s741_s22 = scalar_lea.vmem (!%p814_p11), [#allocation2], %s363_s7 }
  0x44   : > { %580 = dma.done.wait (%p815_p1), %s146_s14, 128  }
  0x45   : > { %582 = vsyncadd (%p815_p1), %s146_s14, 4294967168  ;;  %p816_p4 = scmp.eq.s32.totalorder %s650_s13, 0 }
  0x47   : > { %584 = dma.done.wait (%p816_p4), [#allocation6], 2048   ;;  %p817_p6 = pmov %p816_p4 }
  0x48   : > { %v611_v0 = vmov 0.0   ;;  %vm612_vm0 = vmmov 0   ;;  %v190_v1 = vld [vmem:[#allocation5 + $0x78] sm:$0xff]  ;;  %v189_v2 = vld [vmem:[#allocation5 + $0x70] sm:$0xff]  ;;  %v188_v3 = vld [vmem:[#allocation5 + $0x68] sm:$0xff]  ;;  %s173_s15 = scalar_lea.vmem [#allocation7], %s363_s7 }
  0x49   : > { %586 = vsyncadd (%p817_p6), [#allocation6], 4294965248  ;;  %387 = vmatprep.subr.mxu0 %v611_v0  ;;  %419 = vmatprep.mubr.msk.f32.mxu0 %vm612_vm0, %v611_v0  ;;  %v187_v4 = vld [vmem:[#allocation5 + $0x60] sm:$0xff]  ;;  %v186_v5 = vld [vmem:[#allocation5 + $0x58] sm:$0xff]  ;;  %s276_s17 = sshll.u32 %s173_s15, 4  ;;  %s367_s8 = sshll.u32 %s650_s13, 7  ;;  %s755_s17 = int_to_ptr.vmem [resolvable:$true] %s276_s17 }
  0x4a   : > { %388 = vmatpush3.msra.mxu0 %v190_v1  ;;  %v185_v6 = vld [vmem:[#allocation5 + $0x50] sm:$0xff]  ;;  %v184_v7 = vld [vmem:[#allocation5 + $0x48] sm:$0xff]  ;;  %v183_v8 = vld [vmem:[#allocation5 + $0x40] sm:$0xff]  ;;  %s760_s20 = scalar_lea.hbm %s802_s2, %s367_s8  ;;  %s263_s23 = scalar_lea.sflag [#allocation4], %s735_s6 }
  0x4b   : > { %389 = vmatprep.subr.mxu0 %v611_v0  ;;  %v182_v9 = vld [vmem:[#allocation5 + $0x38] sm:$0xff]  ;;  %v181_v10 = vld [vmem:[#allocation5 + $0x30] sm:$0xff]  ;;  %v180_v11 = vld [vmem:[#allocation5 + $0x28] sm:$0xff]  ;;  %s537_s24 = scalar_lea.vmem %s755_s17, 128  ;;  %p818_p3 = scmp.ne.s32.totalorder %s812_s30, 0 }
  0x4c   : > { %390 = vmatpush3.msra.mxu0 %v189_v2  ;;  %v179_v12 = vld [vmem:[#allocation5 + $0x20] sm:$0xff]  ;;  %v178_v13 = vld [vmem:[#allocation5 + $0x18] sm:$0xff]  ;;  %v177_v14 = vld [vmem:[#allocation5 + $0x10] sm:$0xff]  ;;  %p538_p8 = scmp.ne.s32.totalorder %s755_s17, %s537_s24  ;;  %s613_s13 = smov [#allocation7]  }
  0x4d   : > { %391 = vmatprep.subr.mxu0 %v611_v0  ;;  %v176_v15 = vld [vmem:[#allocation5 + $0x8] sm:$0xff]  ;;  %v175_v16 = vld [vmem:[#allocation5] sm:$0xff]  ;;  %v174_v17 = vld [vmem:[%s741_s22] sm:$0xff]  ;;  %s541_s25 = sshll.u32 %s613_s13, 4  ;;  %s542_s25 = int_to_ptr.vmem [resolvable:$false] %s541_s25 }
  0x4e   : > { %392 = vmatpush3.msra.mxu0 %v188_v3  ;;  %p539_p10 = pnand %p538_p8, %p818_p3  ;;  %s543_s26 = scalar_lea.vmem %s542_s25, 256 }
  0x4f   : > { %393 = vmatprep.subr.mxu0 %v611_v0  ;;  %p544_p12 = scmp.lt.s32.totalorder %s755_s17, %s542_s25  ;;  %p545_p2 = scmp.lt.s32.totalorder %s543_s26, %s537_s24 }
  0x50   : > { %394 = vmatpush3.msra.mxu0 %v187_v4  ;;  %p540_p7 = pneg %p539_p10 }
  0x51   : > { %395 = vmatprep.subr.mxu0 %v611_v0  ;;  %p546_p13 = por %p545_p2, %p544_p12 }
  0x52   : > { %396 = vmatpush3.msra.mxu0 %v186_v5 }
  0x53   : > { %397 = vmatprep.subr.mxu0 %v611_v0  ;;  %p547_p0 = pnand %p546_p13, %p540_p7 }
  0x54   : > { %398 = vmatpush3.msra.mxu0 %v185_v6 }
  0x55   : > { %399 = vmatprep.subr.mxu0 %v611_v0 }
  0x56   : > { %400 = vmatpush3.msra.mxu0 %v184_v7 }
  0x57   : > { %401 = vmatprep.subr.mxu0 %v611_v0 }
  0x58   : > { %402 = vmatpush3.msra.mxu0 %v183_v8 }
  0x59   : > { %403 = vmatprep.subr.mxu0 %v611_v0 }
  0x5a   : > { %404 = vmatpush3.msra.mxu0 %v182_v9 }
  0x5b   : > { %405 = vmatprep.subr.mxu0 %v611_v0 }
  0x5c   : > { %406 = vmatpush3.msra.mxu0 %v181_v10 }
  0x5d   : > { %407 = vmatprep.subr.mxu0 %v611_v0 }
  0x5e   : > { %408 = vmatpush3.msra.mxu0 %v180_v11 }
  0x5f   : > { %409 = vmatprep.subr.mxu0 %v611_v0 }
  0x60   : > { %410 = vmatpush3.msra.mxu0 %v179_v12 }
  0x61   : > { %411 = vmatprep.subr.mxu0 %v611_v0 }
  0x62   : > { %412 = vmatpush3.msra.mxu0 %v178_v13 }
  0x63   : > { %413 = vmatprep.subr.mxu0 %v611_v0 }
  0x64   : > { %414 = vmatpush3.msra.mxu0 %v177_v14 }
  0x65   : > { %415 = vmatprep.subr.mxu0 %v611_v0 }
  0x66   : > { %416 = vmatpush3.msra.mxu0 %v176_v15 }
  0x67   : > { %417 = vmatprep.subr.mxu0 %v611_v0 }
  0x68   : > { %418 = vmatpush3.msra.mxu0 %v175_v16 }
  0x69   : > { %420 = vmatmul.mubr.f32.vlgmr.msra.gmra.mxu0 %v174_v17 }
 0x129   : > { %v257_v18 = vpop.f32.mrf.mxu0 }
 0x12a   : > { %261 = vst [vmem:[%s173_s15] sm:$0xff] %v257_v18 }
 0x12b   : > { %v421_v19 = vpop.f32.mrf.mxu0 }
 0x12c   : > { %550 = shalt.err (!%p547_p0)
}
 0x12d   : > { %s551_s27 = scalar_lea.hbm %s760_s20, 128  ;;  %s555_s4 = scalar_lea.hbm %s802_s2, 512 }
 0x12e   : > { %p552_p5 = scmp.ne.s32.totalorder %s760_s20, %s551_s27  ;;  %p556_p1 = scmp.lt.s32.totalorder %s760_s20, %s802_s2 }
 0x12f   : > { %p557_p4 = scmp.lt.s32.totalorder %s555_s4, %s551_s27 }
 0x130   : > { %p553_p9 = pnand %p552_p5, %p818_p3 }
 0x131   : > { %p558_p6 = por %p557_p4, %p556_p1 }
 0x132   : > { %p554_p11 = pneg %p553_p9 }
 0x134   : > { %p559_p8 = pnand %p558_p6, %p554_p11 }
 0x136   : > { %562 = shalt.err (!%p559_p8)
}
 0x137   : > { %428 = dma.vmem_to_hbm [thread:$0]  (%p818_p3), %s755_s17, 128, %s760_s20, %s263_s23  }
 0x138 PF: > { %p445_p10 = scmp.ge.s32.totalorder %s605_s12, 2  ;;  %s288_s7 = sand.u32 1, %s593_s9  }
 0x139   : > { %p819_p7 = scmp.ne.s32.totalorder %s808_s16, 0  ;;  %s289_s14 = scalar_lea.sflag [#allocation4], %s288_s7 }
 0x13b   : > { %p439_p12 = pnand %p445_p10, %p819_p7 }
 0x13d   : > { %p440_p2 = pneg %p439_p12 }
 0x13f   : > { %588 = dma.done.wait (%p440_p2), %s289_s14, 128  }
 0x140   : > { %590 = vsyncadd (%p440_p2), %s289_s14, 4294967168  ;;  %p16_p13 = scmp.ge.s32.totalorder %s682_s21, 6   ;;  %s820_s9 = smov %s597_s10 }
 0x141   : > { %s821_s10 = smov %s601_s11  ;;  %s822_s11 = smov %s699_s29 }
 0x142   : > { %s823_s12 = smov %s682_s21  ;;  %18 = sbr.rel (!%p16_p13) target bundleno = 6 (0x6), region = 77 }
 0x147   :  { %294 = vsyncpa [#allocation3], 1 }
 0x148   :  { %296 = vsyncpa [#allocation3 + $0x1], 1 }
 0x149   :  { %297 = vsyncpa [#allocation6], 1 }
 0x14a   :  { %298 = vsyncpa [#allocation4], 1 }
 0x14b   :  { %300 = vsyncpa [#allocation4 + $0x1], 1 }

</bundles_post_ra>
